<compile_context>
chip_gen: v6e
topology: v6e:2x2x1
jax: 0.10.0
libtpu: 0.0.40
codegen_flags: <defaults>
</compile_context>

<pallas_src>
import math
import jax
import jax.numpy as jnp
from jax.experimental import pallas as pl
from jax.experimental.pallas import tpu as pltpu

B, S, C = 2, 8, 4
D = 32            # d_model
H = 4             # nhead
HD = D // H       # head dim
FF = 64           # dim_feedforward
BS = B * S
LN_EPS = 1e-5     # torch.nn.LayerNorm default eps

# ---- Row layout of the single packed parameter array (width 128, f32). ----
# Weight sections start on 8-row boundaries so row-slices never cross an
# (8,128) tile boundary.
R_WE    = 0                    # rows [  0,   4) cols [0,32)  : emb weight (C,D)
R_WQKV  = 8                    # rows [  8,  40) cols [0,96)  : fused qkv (D,3D)
R_WO    = R_WQKV + D           # rows [ 40,  72) cols [0,32)  : out-proj (D,D)
R_W1    = R_WO + D             # rows [ 72, 104) cols [0,64)  : FF1 (D,FF)
R_W2    = R_W1 + D             # rows [104, 168) cols [0,32)  : FF2 (FF,D)
R_WF    = R_W2 + FF            # rows [168, 176) cols [0,32)  : folded final W (S,D)
R_PE    = R_WF + S             # rows [176, 192) cols [0,32)  : pe tiled to (B*S,D)
R_BE    = R_PE + BS            # 192 : embedding bias (D)
R_BQKV  = R_BE + 1             # 193 : fused qkv bias (3D), q part pre-scaled
R_BO    = R_BQKV + 1           # 194 : out-proj bias (D)
R_LN1G  = R_BO + 1             # 195
R_LN1B  = R_LN1G + 1           # 196
R_B1    = R_LN1B + 1           # 197 : FF bias 1 (FF)
R_B2    = R_B1 + 1             # 198 : FF bias 2 (D)
R_CONST = R_B2 + 1             # 199 : folded final bias scalar at col 0
P_ROWS  = 200                  # multiple of 8


def encoder_transformer_kernel(
    x_ref,          # (B*S, C)
    p_ref,          # (P_ROWS, 128)  all parameters, packed
    out_ref,        # (B, 1)
    attn_ref,       # scratch (B*S, D) f32
):
    x = x_ref[...]                                          # (BS, C)

    we   = p_ref[R_WE:R_WE + C, 0:D]                        # (C, D)
    wqkv = p_ref[R_WQKV:R_WQKV + D, 0:3 * D]                # (D, 3D)
    wo   = p_ref[R_WO:R_WO + D, 0:D]                        # (D, D)
    w1   = p_ref[R_W1:R_W1 + D, 0:FF]                       # (D, FF)
    w2   = p_ref[R_W2:R_W2 + FF, 0:D]                       # (FF, D)
    wf   = p_ref[R_WF:R_WF + S, 0:D]                        # (S, D), LN2 affine folded
    pe   = p_ref[R_PE:R_PE + BS, 0:D]                       # (BS, D)
    be   = p_ref[R_BE:R_BE + 1, 0:D]
    bqkv = p_ref[R_BQKV:R_BQKV + 1, 0:3 * D]
    bo   = p_ref[R_BO:R_BO + 1, 0:D]
    ln1g = p_ref[R_LN1G:R_LN1G + 1, 0:D]
    ln1b = p_ref[R_LN1B:R_LN1B + 1, 0:D]
    b1   = p_ref[R_B1:R_B1 + 1, 0:FF]
    b2   = p_ref[R_B2:R_B2 + 1, 0:D]
    fconst = p_ref[R_CONST:R_CONST + 1, 0:1]                # (1, 1)

    # ---- InputEmbeddings: Linear(C->D) + ReLU, then + positional encoding ----
    h = jnp.dot(x, we, preferred_element_type=jnp.float32)              # (BS, D)
    h = jnp.maximum(h + be, 0.0) + pe
    # TODO(synk): dropout layers are treated as identity (eval mode).

    # ---- Multi-head self-attention (fused QKV, scale folded into Wq/bq) ----
    qkv = jnp.dot(h, wqkv, preferred_element_type=jnp.float32) + bqkv   # (BS, 3D)
    q = qkv[:, 0:D]
    k = qkv[:, D:2 * D]
    v = qkv[:, 2 * D:3 * D]

    for hh in range(H):                                     # static unroll (H=4)
        lo = hh * HD
        qh = q[:, lo:lo + HD].reshape(B, S, HD)
        kh = k[:, lo:lo + HD].reshape(B, S, HD)
        vh = v[:, lo:lo + HD].reshape(B, S, HD)
        s = jnp.einsum('bqe,bke->bqk', qh, kh,
                       preferred_element_type=jnp.float32)  # already scaled
        s = s - jnp.max(s, axis=-1, keepdims=True)
        p = jnp.exp(s)
        p = p * pl.reciprocal(jnp.sum(p, axis=-1, keepdims=True), approx=True)
        oh = jnp.einsum('bqk,bke->bqe', p, vh,
                        preferred_element_type=jnp.float32)  # (B, S, HD)
        attn_ref[:, lo:lo + HD] = oh.reshape(BS, HD)

    attn = jnp.dot(attn_ref[...], wo, preferred_element_type=jnp.float32) + bo
    h = h + attn

    # ---- LayerNorm 1 (post-LN) ----
    mu = jnp.mean(h, axis=-1, keepdims=True)
    var = jnp.mean((h - mu) ** 2, axis=-1, keepdims=True)
    h = (h - mu) * jax.lax.rsqrt(var + LN_EPS)
    h = h * ln1g + ln1b

    # ---- FeedForward: relu(h W1 + b1) W2 + b2, residual ----
    ff = jnp.dot(h, w1, preferred_element_type=jnp.float32) + b1
    ff = jnp.maximum(ff, 0.0)
    ff = jnp.dot(ff, w2, preferred_element_type=jnp.float32) + b2
    h = h + ff

    # ---- LayerNorm 2 (affine folded into wf / fconst on the host) ----
    mu = jnp.mean(h, axis=-1, keepdims=True)
    var = jnp.mean((h - mu) ** 2, axis=-1, keepdims=True)
    hn = (h - mu) * jax.lax.rsqrt(var + LN_EPS)

    # ---- FinalBlock 'double_linear' folded: y[b] = sum_{s,d} hn*Wf + const ----
    h3 = hn.reshape(B, S, D)
    t = h3 * wf[None, :, :]
    y = jnp.sum(t, axis=2, keepdims=True)       # (B, S, 1)
    y = jnp.sum(y, axis=1, keepdims=True)       # (B, 1, 1)
    out_ref[...] = y.reshape(B, 1) + fconst


def make_positional_encoding(seq_len, d_model, omega=10000.0):
    position = jnp.arange(seq_len, dtype=jnp.float32)[:, None]
    div_term = jnp.exp(jnp.arange(0, d_model, 2, dtype=jnp.float32)
                       * (-math.log(omega) / d_model))
    pe = jnp.zeros((seq_len, d_model), dtype=jnp.float32)
    pe = pe.at[:, 0::2].set(jnp.sin(position * div_term))
    pe = pe.at[:, 1::2].set(jnp.cos(position * div_term))
    return pe


def make_params(key):
    """Parameters in the original PyTorch (out, in) layout."""
    ks = jax.random.split(key, 16)
    p = {}
    p['we'] = jax.random.normal(ks[0], (D, C), jnp.float32) * 0.1
    p['be'] = jax.random.normal(ks[1], (1, D), jnp.float32) * 0.01
    p['pe'] = make_positional_encoding(S, D)
    p['wqkv'] = jax.random.normal(ks[2], (3 * D, D), jnp.float32) * 0.1
    p['bqkv'] = jax.random.normal(ks[3], (1, 3 * D), jnp.float32) * 0.01
    p['wo'] = jax.random.normal(ks[4], (D, D), jnp.float32) * 0.1
    p['bo'] = jax.random.normal(ks[5], (1, D), jnp.float32) * 0.01
    p['ln1g'] = jnp.ones((1, D), jnp.float32)
    p['ln1b'] = jnp.zeros((1, D), jnp.float32)
    p['w1'] = jax.random.normal(ks[6], (FF, D), jnp.float32) * 0.1
    p['b1'] = jax.random.normal(ks[7], (1, FF), jnp.float32) * 0.01
    p['w2'] = jax.random.normal(ks[8], (D, FF), jnp.float32) * 0.1
    p['b2'] = jax.random.normal(ks[9], (1, D), jnp.float32) * 0.01
    p['ln2g'] = jnp.ones((1, D), jnp.float32)
    p['ln2b'] = jnp.zeros((1, D), jnp.float32)
    p['fw1'] = jax.random.normal(ks[10], (1, D), jnp.float32) * 0.1
    p['fb1'] = jax.random.normal(ks[11], (1, 1), jnp.float32) * 0.01
    p['fw2'] = jax.random.normal(ks[12], (1, S), jnp.float32) * 0.1
    p['fb2'] = jax.random.normal(ks[13], (1, 1), jnp.float32) * 0.01
    return p


def prepare_kernel_params(p):
    """Host-side one-time prep: transpose to (in,out), fuse, fold, pack."""
    scale = 1.0 / math.sqrt(HD)

    we_t = p['we'].T                                   # (C, D)
    wqkv_t = p['wqkv'].T                               # (D, 3D)
    wqkv_t = wqkv_t.at[:, 0:D].multiply(scale)         # fold 1/sqrt(HD) into Wq
    wo_t = p['wo'].T                                   # (D, D)
    w1_t = p['w1'].T                                   # (D, FF)
    w2_t = p['w2'].T                                   # (FF, D)

    bqkv = p['bqkv'][0]
    bqkv = bqkv.at[0:D].multiply(scale)                # fold scale into q bias

    # Fold the final double-linear: y = sum_{s,d} hn2*Wf_base + const_base
    wf_base = p['fw2'].reshape(S, 1) * p['fw1'].reshape(1, D)          # (S, D)
    fconst_base = p['fb1'][0, 0] * jnp.sum(p['fw2']) + p['fb2'][0, 0]
    # Fold LayerNorm-2 affine (gamma/beta) into the final weight / bias.
    wf = wf_base * p['ln2g']                                           # (S, D)
    fconst = fconst_base + jnp.sum(wf_base * p['ln2b'])

    pk = jnp.zeros((P_ROWS, 128), jnp.float32)
    pk = pk.at[R_WE:R_WE + C, 0:D].set(we_t)
    pk = pk.at[R_WQKV:R_WQKV + D, 0:3 * D].set(wqkv_t)
    pk = pk.at[R_WO:R_WO + D, 0:D].set(wo_t)
    pk = pk.at[R_W1:R_W1 + D, 0:FF].set(w1_t)
    pk = pk.at[R_W2:R_W2 + FF, 0:D].set(w2_t)
    pk = pk.at[R_WF:R_WF + S, 0:D].set(wf)
    pk = pk.at[R_PE:R_PE + BS, 0:D].set(jnp.tile(p['pe'], (B, 1)))
    pk = pk.at[R_BE, 0:D].set(p['be'][0])
    pk = pk.at[R_BQKV, 0:3 * D].set(bqkv)
    pk = pk.at[R_BO, 0:D].set(p['bo'][0])
    pk = pk.at[R_LN1G, 0:D].set(p['ln1g'][0])
    pk = pk.at[R_LN1B, 0:D].set(p['ln1b'][0])
    pk = pk.at[R_B1, 0:FF].set(p['b1'][0])
    pk = pk.at[R_B2, 0:D].set(p['b2'][0])
    pk = pk.at[R_CONST, 0].set(fconst)
    return pk


def encoder_transformer(x, packed):
    """x: (1, B, S, C) -> (B,)   (mirrors ModelWrapper: x.squeeze(0); model(x))"""
    x = x.reshape(B, S, C)            # squeeze(0)
    x2 = x.reshape(BS, C)
    vmem = pl.BlockSpec(memory_space=pltpu.MemorySpace.VMEM)
    out = pl.pallas_call(
        encoder_transformer_kernel,
        out_shape=jax.ShapeDtypeStruct((B, 1), jnp.float32),
        in_specs=[vmem, vmem],
        out_specs=vmem,
        scratch_shapes=[pltpu.VMEM((BS, D), jnp.float32)],
    )(x2, packed)
    return out[:, 0]                  # final .squeeze() -> (B,)


def reference(x, p):
    """Pure-JAX mirror of the PyTorch forward pass (eval mode). x: (B,S,C)."""
    h = jnp.maximum(jnp.einsum('bsc,dc->bsd', x, p['we']) + p['be'][None], 0.0)
    h = h + p['pe'][None]
    q = jnp.einsum('bsd,ed->bse', h, p['wqkv'][0:D]) + p['bqkv'][0, 0:D]
    k = jnp.einsum('bsd,ed->bse', h, p['wqkv'][D:2 * D]) + p['bqkv'][0, D:2 * D]
    v = jnp.einsum('bsd,ed->bse', h, p['wqkv'][2 * D:]) + p['bqkv'][0, 2 * D:]
    qh = q.reshape(B, S, H, HD); kh = k.reshape(B, S, H, HD); vh = v.reshape(B, S, H, HD)
    s = jnp.einsum('bqhe,bkhe->bhqk', qh, kh) / math.sqrt(HD)
    pw = jax.nn.softmax(s, axis=-1)
    attn = jnp.einsum('bhqk,bkhe->bqhe', pw, vh).reshape(B, S, D)
    attn = jnp.einsum('bsd,ed->bse', attn, p['wo']) + p['bo'][None]
    h = h + attn
    mu = h.mean(-1, keepdims=True); var = ((h - mu) ** 2).mean(-1, keepdims=True)
    h = (h - mu) / jnp.sqrt(var + LN_EPS) * p['ln1g'][None] + p['ln1b'][None]
    ff = jnp.maximum(jnp.einsum('bsd,fd->bsf', h, p['w1']) + p['b1'][None], 0.0)
    ff = jnp.einsum('bsf,df->bsd', ff, p['w2']) + p['b2'][None]
    h = h + ff
    mu = h.mean(-1, keepdims=True); var = ((h - mu) ** 2).mean(-1, keepdims=True)
    h = (h - mu) / jnp.sqrt(var + LN_EPS) * p['ln2g'][None] + p['ln2b'][None]
    y1 = (jnp.einsum('bsd,od->bso', h, p['fw1']) + p['fb1'][None])[:, :, 0]
    y2 = jnp.einsum('bs,os->bo', y1, p['fw2']) + p['fb2']
    return y2[:, 0]


if __name__ == "__main__":
    key = jax.random.PRNGKey(0)
    kx, kp = jax.random.split(key)
    x = jax.random.normal(kx, (1, B, S, C), jnp.float32)   # extra leading dim, like ptflops
    params = make_params(kp)
    packed = prepare_kernel_params(params)                  # one-time host-side prep

    out = jax.block_until_ready(encoder_transformer(x, packed))
    ref = jax.block_until_ready(reference(x.reshape(B, S, C), params))

    assert out.shape == (B,), out.shape
    # approx reciprocal (softmax) / rsqrt (LN) -> slightly relaxed tolerance
    assert jnp.allclose(out, ref, atol=5e-3, rtol=5e-3), (out, ref)
    print("KERNEL_OK")
</pallas_src>

<mosaic_0001>
module attributes {stable_mosaic.version = 11 : i64} {
  func.func @encoder_transformer_kernel(%arg0: memref<16x4xf32, #tpu.memory_space<vmem>>, %arg1: memref<200x128xf32, #tpu.memory_space<vmem>>, %arg2: memref<2x1xf32, #tpu.memory_space<vmem>>, %arg3: memref<16x32xf32, #tpu.memory_space<vmem>>) attributes {dimension_semantics = [], scalar_prefetch = 0 : i64, scratch_operands = 1 : i64, tpu.core_type = #tpu.core_type<tc>} {
    %c0 = arith.constant 0 : index
    %c0_0 = arith.constant 0 : index
    %0 = vector.load %arg0[%c0, %c0_0] : memref<16x4xf32, #tpu.memory_space<vmem>>, vector<16x4xf32>
    %c0_1 = arith.constant 0 : index
    %c0_2 = arith.constant 0 : index
    %1 = vector.load %arg1[%c0_1, %c0_2] : memref<200x128xf32, #tpu.memory_space<vmem>>, vector<4x32xf32>
    %c8 = arith.constant 8 : index
    %c0_3 = arith.constant 0 : index
    %2 = vector.load %arg1[%c8, %c0_3] : memref<200x128xf32, #tpu.memory_space<vmem>>, vector<32x96xf32>
    %c40 = arith.constant 40 : index
    %c0_4 = arith.constant 0 : index
    %3 = vector.load %arg1[%c40, %c0_4] : memref<200x128xf32, #tpu.memory_space<vmem>>, vector<32x32xf32>
    %c72 = arith.constant 72 : index
    %c0_5 = arith.constant 0 : index
    %4 = vector.load %arg1[%c72, %c0_5] : memref<200x128xf32, #tpu.memory_space<vmem>>, vector<32x64xf32>
    %c104 = arith.constant 104 : index
    %c0_6 = arith.constant 0 : index
    %5 = vector.load %arg1[%c104, %c0_6] : memref<200x128xf32, #tpu.memory_space<vmem>>, vector<64x32xf32>
    %c168 = arith.constant 168 : index
    %c0_7 = arith.constant 0 : index
    %6 = vector.load %arg1[%c168, %c0_7] : memref<200x128xf32, #tpu.memory_space<vmem>>, vector<8x32xf32>
    %c176 = arith.constant 176 : index
    %c0_8 = arith.constant 0 : index
    %7 = vector.load %arg1[%c176, %c0_8] : memref<200x128xf32, #tpu.memory_space<vmem>>, vector<16x32xf32>
    %c192 = arith.constant 192 : index
    %c0_9 = arith.constant 0 : index
    %8 = vector.load %arg1[%c192, %c0_9] : memref<200x128xf32, #tpu.memory_space<vmem>>, vector<1x32xf32>
    %c193 = arith.constant 193 : index
    %c0_10 = arith.constant 0 : index
    %9 = vector.load %arg1[%c193, %c0_10] : memref<200x128xf32, #tpu.memory_space<vmem>>, vector<1x96xf32>
    %c194 = arith.constant 194 : index
    %c0_11 = arith.constant 0 : index
    %10 = vector.load %arg1[%c194, %c0_11] : memref<200x128xf32, #tpu.memory_space<vmem>>, vector<1x32xf32>
    %c195 = arith.constant 195 : index
    %c0_12 = arith.constant 0 : index
    %11 = vector.load %arg1[%c195, %c0_12] : memref<200x128xf32, #tpu.memory_space<vmem>>, vector<1x32xf32>
    %c196 = arith.constant 196 : index
    %c0_13 = arith.constant 0 : index
    %12 = vector.load %arg1[%c196, %c0_13] : memref<200x128xf32, #tpu.memory_space<vmem>>, vector<1x32xf32>
    %c197 = arith.constant 197 : index
    %c0_14 = arith.constant 0 : index
    %13 = vector.load %arg1[%c197, %c0_14] : memref<200x128xf32, #tpu.memory_space<vmem>>, vector<1x64xf32>
    %c198 = arith.constant 198 : index
    %c0_15 = arith.constant 0 : index
    %14 = vector.load %arg1[%c198, %c0_15] : memref<200x128xf32, #tpu.memory_space<vmem>>, vector<1x32xf32>
    %c199 = arith.constant 199 : index
    %c0_16 = arith.constant 0 : index
    %15 = vector.load %arg1[%c199, %c0_16] : memref<200x128xf32, #tpu.memory_space<vmem>>, vector<1x1xf32>
    %cst = arith.constant dense<0.000000e+00> : vector<16x32xf32>
    %16 = tpu.matmul %0, %1, %cst {dimension_numbers = #tpu.dot_dimension_numbers<[1], [0], [0], [1], [0, 0, 1, 1], [], []>} : vector<16x4xf32>, vector<4x32xf32>, vector<16x32xf32> -> vector<16x32xf32>
    %17 = vector.broadcast %8 : vector<1x32xf32> to vector<16x32xf32>
    %18 = arith.addf %16, %17 : vector<16x32xf32>
    %cst_17 = arith.constant 0.000000e+00 : f32
    %19 = vector.broadcast %cst_17 : f32 to vector<16x32xf32>
    %20 = arith.maximumf %18, %19 : vector<16x32xf32>
    %21 = arith.addf %20, %7 : vector<16x32xf32>
    %cst_18 = arith.constant dense<0.000000e+00> : vector<16x96xf32>
    %22 = tpu.matmul %21, %2, %cst_18 {dimension_numbers = #tpu.dot_dimension_numbers<[1], [0], [0], [1], [0, 0, 1, 1], [], []>} : vector<16x32xf32>, vector<32x96xf32>, vector<16x96xf32> -> vector<16x96xf32>
    %23 = vector.broadcast %9 : vector<1x96xf32> to vector<16x96xf32>
    %24 = arith.addf %22, %23 : vector<16x96xf32>
    %25 = vector.extract_strided_slice %24 {offsets = [0, 0], sizes = [16, 32], strides = [1, 1]} : vector<16x96xf32> to vector<16x32xf32>
    %26 = vector.extract_strided_slice %24 {offsets = [0, 32], sizes = [16, 32], strides = [1, 1]} : vector<16x96xf32> to vector<16x32xf32>
    %27 = vector.extract_strided_slice %24 {offsets = [0, 64], sizes = [16, 32], strides = [1, 1]} : vector<16x96xf32> to vector<16x32xf32>
    %28 = vector.extract_strided_slice %25 {offsets = [0, 0], sizes = [16, 8], strides = [1, 1]} : vector<16x32xf32> to vector<16x8xf32>
    %29 = vector.shape_cast %28 : vector<16x8xf32> to vector<2x8x8xf32>
    %30 = vector.extract_strided_slice %26 {offsets = [0, 0], sizes = [16, 8], strides = [1, 1]} : vector<16x32xf32> to vector<16x8xf32>
    %31 = vector.shape_cast %30 : vector<16x8xf32> to vector<2x8x8xf32>
    %32 = vector.extract_strided_slice %27 {offsets = [0, 0], sizes = [16, 8], strides = [1, 1]} : vector<16x32xf32> to vector<16x8xf32>
    %33 = vector.shape_cast %32 : vector<16x8xf32> to vector<2x8x8xf32>
    "tpu.trace_start"() <{level = 10 : i32, message = "bqe,bke->bqk"}> : () -> ()
    %cst_19 = arith.constant dense<0.000000e+00> : vector<2x8x8xf32>
    %34 = tpu.matmul %29, %31, %cst_19 {dimension_numbers = #tpu.dot_dimension_numbers<[2], [2], [1], [1], [0, 0, 0, 1, 1, 1], [0], [0]>} : vector<2x8x8xf32>, vector<2x8x8xf32>, vector<2x8x8xf32> -> vector<2x8x8xf32>
    "tpu.trace_stop"() : () -> ()
    %cst_20 = arith.constant dense<0xFF800000> : vector<2x8xf32>
    %35 = vector.multi_reduction <maximumf>, %34, %cst_20 [2] : vector<2x8x8xf32> to vector<2x8xf32>
    %36 = vector.shape_cast %35 : vector<2x8xf32> to vector<2x8x1xf32>
    %37 = vector.broadcast %36 : vector<2x8x1xf32> to vector<2x8x8xf32>
    %38 = arith.subf %34, %37 : vector<2x8x8xf32>
    %39 = math.exp %38 : vector<2x8x8xf32>
    %cst_21 = arith.constant dense<0.000000e+00> : vector<2x8xf32>
    %40 = vector.multi_reduction <add>, %39, %cst_21 [2] : vector<2x8x8xf32> to vector<2x8xf32>
    %41 = vector.shape_cast %40 : vector<2x8xf32> to vector<2x8x1xf32>
    %42 = tpu.reciprocal %41 {approx = true} : vector<2x8x1xf32> -> vector<2x8x1xf32>
    %43 = vector.broadcast %42 : vector<2x8x1xf32> to vector<2x8x8xf32>
    %44 = arith.mulf %39, %43 : vector<2x8x8xf32>
    "tpu.trace_start"() <{level = 10 : i32, message = "bqk,bke->bqe"}> : () -> ()
    %cst_22 = arith.constant dense<0.000000e+00> : vector<2x8x8xf32>
    %45 = tpu.matmul %44, %33, %cst_22 {dimension_numbers = #tpu.dot_dimension_numbers<[2], [1], [1], [2], [0, 0, 0, 1, 1, 2], [0], [0]>} : vector<2x8x8xf32>, vector<2x8x8xf32>, vector<2x8x8xf32> -> vector<2x8x8xf32>
    "tpu.trace_stop"() : () -> ()
    %46 = vector.shape_cast %45 : vector<2x8x8xf32> to vector<16x8xf32>
    %c0_23 = arith.constant 0 : index
    %c0_24 = arith.constant 0 : index
    %47 = vector.load %arg3[%c0_23, %c0_24] : memref<16x32xf32, #tpu.memory_space<vmem>>, vector<16x8xf32>
    tpu.vector_store %arg3[%c0_23, %c0_24], %46 {strides = array<i32>} : memref<16x32xf32, #tpu.memory_space<vmem>>, vector<16x8xf32>,
    %48 = vector.extract_strided_slice %25 {offsets = [0, 8], sizes = [16, 8], strides = [1, 1]} : vector<16x32xf32> to vector<16x8xf32>
    %49 = vector.shape_cast %48 : vector<16x8xf32> to vector<2x8x8xf32>
    %50 = vector.extract_strided_slice %26 {offsets = [0, 8], sizes = [16, 8], strides = [1, 1]} : vector<16x32xf32> to vector<16x8xf32>
    %51 = vector.shape_cast %50 : vector<16x8xf32> to vector<2x8x8xf32>
    %52 = vector.extract_strided_slice %27 {offsets = [0, 8], sizes = [16, 8], strides = [1, 1]} : vector<16x32xf32> to vector<16x8xf32>
    %53 = vector.shape_cast %52 : vector<16x8xf32> to vector<2x8x8xf32>
    "tpu.trace_start"() <{level = 10 : i32, message = "bqe,bke->bqk"}> : () -> ()
    %cst_25 = arith.constant dense<0.000000e+00> : vector<2x8x8xf32>
    %54 = tpu.matmul %49, %51, %cst_25 {dimension_numbers = #tpu.dot_dimension_numbers<[2], [2], [1], [1], [0, 0, 0, 1, 1, 1], [0], [0]>} : vector<2x8x8xf32>, vector<2x8x8xf32>, vector<2x8x8xf32> -> vector<2x8x8xf32>
    "tpu.trace_stop"() : () -> ()
    %cst_26 = arith.constant dense<0xFF800000> : vector<2x8xf32>
    %55 = vector.multi_reduction <maximumf>, %54, %cst_26 [2] : vector<2x8x8xf32> to vector<2x8xf32>
    %56 = vector.shape_cast %55 : vector<2x8xf32> to vector<2x8x1xf32>
    %57 = vector.broadcast %56 : vector<2x8x1xf32> to vector<2x8x8xf32>
    %58 = arith.subf %54, %57 : vector<2x8x8xf32>
    %59 = math.exp %58 : vector<2x8x8xf32>
    %cst_27 = arith.constant dense<0.000000e+00> : vector<2x8xf32>
    %60 = vector.multi_reduction <add>, %59, %cst_27 [2] : vector<2x8x8xf32> to vector<2x8xf32>
    %61 = vector.shape_cast %60 : vector<2x8xf32> to vector<2x8x1xf32>
    %62 = tpu.reciprocal %61 {approx = true} : vector<2x8x1xf32> -> vector<2x8x1xf32>
    %63 = vector.broadcast %62 : vector<2x8x1xf32> to vector<2x8x8xf32>
    %64 = arith.mulf %59, %63 : vector<2x8x8xf32>
    "tpu.trace_start"() <{level = 10 : i32, message = "bqk,bke->bqe"}> : () -> ()
    %cst_28 = arith.constant dense<0.000000e+00> : vector<2x8x8xf32>
    %65 = tpu.matmul %64, %53, %cst_28 {dimension_numbers = #tpu.dot_dimension_numbers<[2], [1], [1], [2], [0, 0, 0, 1, 1, 2], [0], [0]>} : vector<2x8x8xf32>, vector<2x8x8xf32>, vector<2x8x8xf32> -> vector<2x8x8xf32>
    "tpu.trace_stop"() : () -> ()
    %66 = vector.shape_cast %65 : vector<2x8x8xf32> to vector<16x8xf32>
    %c0_29 = arith.constant 0 : index
    %c8_30 = arith.constant 8 : index
    %67 = vector.load %arg3[%c0_29, %c8_30] : memref<16x32xf32, #tpu.memory_space<vmem>>, vector<16x8xf32>
    tpu.vector_store %arg3[%c0_29, %c8_30], %66 {strides = array<i32>} : memref<16x32xf32, #tpu.memory_space<vmem>>, vector<16x8xf32>,
    %68 = vector.extract_strided_slice %25 {offsets = [0, 16], sizes = [16, 8], strides = [1, 1]} : vector<16x32xf32> to vector<16x8xf32>
    %69 = vector.shape_cast %68 : vector<16x8xf32> to vector<2x8x8xf32>
    %70 = vector.extract_strided_slice %26 {offsets = [0, 16], sizes = [16, 8], strides = [1, 1]} : vector<16x32xf32> to vector<16x8xf32>
    %71 = vector.shape_cast %70 : vector<16x8xf32> to vector<2x8x8xf32>
    %72 = vector.extract_strided_slice %27 {offsets = [0, 16], sizes = [16, 8], strides = [1, 1]} : vector<16x32xf32> to vector<16x8xf32>
    %73 = vector.shape_cast %72 : vector<16x8xf32> to vector<2x8x8xf32>
    "tpu.trace_start"() <{level = 10 : i32, message = "bqe,bke->bqk"}> : () -> ()
    %cst_31 = arith.constant dense<0.000000e+00> : vector<2x8x8xf32>
    %74 = tpu.matmul %69, %71, %cst_31 {dimension_numbers = #tpu.dot_dimension_numbers<[2], [2], [1], [1], [0, 0, 0, 1, 1, 1], [0], [0]>} : vector<2x8x8xf32>, vector<2x8x8xf32>, vector<2x8x8xf32> -> vector<2x8x8xf32>
    "tpu.trace_stop"() : () -> ()
    %cst_32 = arith.constant dense<0xFF800000> : vector<2x8xf32>
    %75 = vector.multi_reduction <maximumf>, %74, %cst_32 [2] : vector<2x8x8xf32> to vector<2x8xf32>
    %76 = vector.shape_cast %75 : vector<2x8xf32> to vector<2x8x1xf32>
    %77 = vector.broadcast %76 : vector<2x8x1xf32> to vector<2x8x8xf32>
    %78 = arith.subf %74, %77 : vector<2x8x8xf32>
    %79 = math.exp %78 : vector<2x8x8xf32>
    %cst_33 = arith.constant dense<0.000000e+00> : vector<2x8xf32>
    %80 = vector.multi_reduction <add>, %79, %cst_33 [2] : vector<2x8x8xf32> to vector<2x8xf32>
    %81 = vector.shape_cast %80 : vector<2x8xf32> to vector<2x8x1xf32>
    %82 = tpu.reciprocal %81 {approx = true} : vector<2x8x1xf32> -> vector<2x8x1xf32>
    %83 = vector.broadcast %82 : vector<2x8x1xf32> to vector<2x8x8xf32>
    %84 = arith.mulf %79, %83 : vector<2x8x8xf32>
    "tpu.trace_start"() <{level = 10 : i32, message = "bqk,bke->bqe"}> : () -> ()
    %cst_34 = arith.constant dense<0.000000e+00> : vector<2x8x8xf32>
    %85 = tpu.matmul %84, %73, %cst_34 {dimension_numbers = #tpu.dot_dimension_numbers<[2], [1], [1], [2], [0, 0, 0, 1, 1, 2], [0], [0]>} : vector<2x8x8xf32>, vector<2x8x8xf32>, vector<2x8x8xf32> -> vector<2x8x8xf32>
    "tpu.trace_stop"() : () -> ()
    %86 = vector.shape_cast %85 : vector<2x8x8xf32> to vector<16x8xf32>
    %c0_35 = arith.constant 0 : index
    %c16 = arith.constant 16 : index
    %87 = vector.load %arg3[%c0_35, %c16] : memref<16x32xf32, #tpu.memory_space<vmem>>, vector<16x8xf32>
    tpu.vector_store %arg3[%c0_35, %c16], %86 {strides = array<i32>} : memref<16x32xf32, #tpu.memory_space<vmem>>, vector<16x8xf32>,
    %88 = vector.extract_strided_slice %25 {offsets = [0, 24], sizes = [16, 8], strides = [1, 1]} : vector<16x32xf32> to vector<16x8xf32>
    %89 = vector.shape_cast %88 : vector<16x8xf32> to vector<2x8x8xf32>
    %90 = vector.extract_strided_slice %26 {offsets = [0, 24], sizes = [16, 8], strides = [1, 1]} : vector<16x32xf32> to vector<16x8xf32>
    %91 = vector.shape_cast %90 : vector<16x8xf32> to vector<2x8x8xf32>
    %92 = vector.extract_strided_slice %27 {offsets = [0, 24], sizes = [16, 8], strides = [1, 1]} : vector<16x32xf32> to vector<16x8xf32>
    %93 = vector.shape_cast %92 : vector<16x8xf32> to vector<2x8x8xf32>
    "tpu.trace_start"() <{level = 10 : i32, message = "bqe,bke->bqk"}> : () -> ()
    %cst_36 = arith.constant dense<0.000000e+00> : vector<2x8x8xf32>
    %94 = tpu.matmul %89, %91, %cst_36 {dimension_numbers = #tpu.dot_dimension_numbers<[2], [2], [1], [1], [0, 0, 0, 1, 1, 1], [0], [0]>} : vector<2x8x8xf32>, vector<2x8x8xf32>, vector<2x8x8xf32> -> vector<2x8x8xf32>
    "tpu.trace_stop"() : () -> ()
    %cst_37 = arith.constant dense<0xFF800000> : vector<2x8xf32>
    %95 = vector.multi_reduction <maximumf>, %94, %cst_37 [2] : vector<2x8x8xf32> to vector<2x8xf32>
    %96 = vector.shape_cast %95 : vector<2x8xf32> to vector<2x8x1xf32>
    %97 = vector.broadcast %96 : vector<2x8x1xf32> to vector<2x8x8xf32>
    %98 = arith.subf %94, %97 : vector<2x8x8xf32>
    %99 = math.exp %98 : vector<2x8x8xf32>
    %cst_38 = arith.constant dense<0.000000e+00> : vector<2x8xf32>
    %100 = vector.multi_reduction <add>, %99, %cst_38 [2] : vector<2x8x8xf32> to vector<2x8xf32>
    %101 = vector.shape_cast %100 : vector<2x8xf32> to vector<2x8x1xf32>
    %102 = tpu.reciprocal %101 {approx = true} : vector<2x8x1xf32> -> vector<2x8x1xf32>
    %103 = vector.broadcast %102 : vector<2x8x1xf32> to vector<2x8x8xf32>
    %104 = arith.mulf %99, %103 : vector<2x8x8xf32>
    "tpu.trace_start"() <{level = 10 : i32, message = "bqk,bke->bqe"}> : () -> ()
    %cst_39 = arith.constant dense<0.000000e+00> : vector<2x8x8xf32>
    %105 = tpu.matmul %104, %93, %cst_39 {dimension_numbers = #tpu.dot_dimension_numbers<[2], [1], [1], [2], [0, 0, 0, 1, 1, 2], [0], [0]>} : vector<2x8x8xf32>, vector<2x8x8xf32>, vector<2x8x8xf32> -> vector<2x8x8xf32>
    "tpu.trace_stop"() : () -> ()
    %106 = vector.shape_cast %105 : vector<2x8x8xf32> to vector<16x8xf32>
    %c0_40 = arith.constant 0 : index
    %c24 = arith.constant 24 : index
    %107 = vector.load %arg3[%c0_40, %c24] : memref<16x32xf32, #tpu.memory_space<vmem>>, vector<16x8xf32>
    tpu.vector_store %arg3[%c0_40, %c24], %106 {strides = array<i32>} : memref<16x32xf32, #tpu.memory_space<vmem>>, vector<16x8xf32>,
    %c0_41 = arith.constant 0 : index
    %c0_42 = arith.constant 0 : index
    %108 = vector.load %arg3[%c0_41, %c0_42] : memref<16x32xf32, #tpu.memory_space<vmem>>, vector<16x32xf32>
    %cst_43 = arith.constant dense<0.000000e+00> : vector<16x32xf32>
    %109 = tpu.matmul %108, %3, %cst_43 {dimension_numbers = #tpu.dot_dimension_numbers<[1], [0], [0], [1], [0, 0, 1, 1], [], []>} : vector<16x32xf32>, vector<32x32xf32>, vector<16x32xf32> -> vector<16x32xf32>
    %110 = vector.broadcast %10 : vector<1x32xf32> to vector<16x32xf32>
    %111 = arith.addf %109, %110 : vector<16x32xf32>
    %112 = arith.addf %21, %111 : vector<16x32xf32>
    %cst_44 = arith.constant dense<0.000000e+00> : vector<16xf32>
    %113 = vector.multi_reduction <add>, %112, %cst_44 [1] : vector<16x32xf32> to vector<16xf32>
    %114 = vector.shape_cast %113 : vector<16xf32> to vector<16x1xf32>
    %cst_45 = arith.constant 3.200000e+01 : f32
    %115 = vector.broadcast %cst_45 : f32 to vector<16x1xf32>
    %116 = arith.divf %114, %115 : vector<16x1xf32>
    %117 = vector.broadcast %116 : vector<16x1xf32> to vector<16x32xf32>
    %118 = arith.subf %112, %117 : vector<16x32xf32>
    %119 = arith.mulf %118, %118 : vector<16x32xf32>
    %cst_46 = arith.constant dense<0.000000e+00> : vector<16xf32>
    %120 = vector.multi_reduction <add>, %119, %cst_46 [1] : vector<16x32xf32> to vector<16xf32>
    %121 = vector.shape_cast %120 : vector<16xf32> to vector<16x1xf32>
    %cst_47 = arith.constant 3.200000e+01 : f32
    %122 = vector.broadcast %cst_47 : f32 to vector<16x1xf32>
    %123 = arith.divf %121, %122 : vector<16x1xf32>
    %124 = vector.broadcast %116 : vector<16x1xf32> to vector<16x32xf32>
    %125 = arith.subf %112, %124 : vector<16x32xf32>
    %cst_48 = arith.constant 9.99999974E-6 : f32
    %126 = vector.broadcast %cst_48 : f32 to vector<16x1xf32>
    %127 = arith.addf %123, %126 : vector<16x1xf32>
    %128 = math.rsqrt %127 : vector<16x1xf32>
    %129 = vector.broadcast %128 : vector<16x1xf32> to vector<16x32xf32>
    %130 = arith.mulf %125, %129 : vector<16x32xf32>
    %131 = vector.broadcast %11 : vector<1x32xf32> to vector<16x32xf32>
    %132 = arith.mulf %130, %131 : vector<16x32xf32>
    %133 = vector.broadcast %12 : vector<1x32xf32> to vector<16x32xf32>
    %134 = arith.addf %132, %133 : vector<16x32xf32>
    %cst_49 = arith.constant dense<0.000000e+00> : vector<16x64xf32>
    %135 = tpu.matmul %134, %4, %cst_49 {dimension_numbers = #tpu.dot_dimension_numbers<[1], [0], [0], [1], [0, 0, 1, 1], [], []>} : vector<16x32xf32>, vector<32x64xf32>, vector<16x64xf32> -> vector<16x64xf32>
    %136 = vector.broadcast %13 : vector<1x64xf32> to vector<16x64xf32>
    %137 = arith.addf %135, %136 : vector<16x64xf32>
    %cst_50 = arith.constant 0.000000e+00 : f32
    %138 = vector.broadcast %cst_50 : f32 to vector<16x64xf32>
    %139 = arith.maximumf %137, %138 : vector<16x64xf32>
    %cst_51 = arith.constant dense<0.000000e+00> : vector<16x32xf32>
    %140 = tpu.matmul %139, %5, %cst_51 {dimension_numbers = #tpu.dot_dimension_numbers<[1], [0], [0], [1], [0, 0, 1, 1], [], []>} : vector<16x64xf32>, vector<64x32xf32>, vector<16x32xf32> -> vector<16x32xf32>
    %141 = vector.broadcast %14 : vector<1x32xf32> to vector<16x32xf32>
    %142 = arith.addf %140, %141 : vector<16x32xf32>
    %143 = arith.addf %134, %142 : vector<16x32xf32>
    %cst_52 = arith.constant dense<0.000000e+00> : vector<16xf32>
    %144 = vector.multi_reduction <add>, %143, %cst_52 [1] : vector<16x32xf32> to vector<16xf32>
    %145 = vector.shape_cast %144 : vector<16xf32> to vector<16x1xf32>
    %cst_53 = arith.constant 3.200000e+01 : f32
    %146 = vector.broadcast %cst_53 : f32 to vector<16x1xf32>
    %147 = arith.divf %145, %146 : vector<16x1xf32>
    %148 = vector.broadcast %147 : vector<16x1xf32> to vector<16x32xf32>
    %149 = arith.subf %143, %148 : vector<16x32xf32>
    %150 = arith.mulf %149, %149 : vector<16x32xf32>
    %cst_54 = arith.constant dense<0.000000e+00> : vector<16xf32>
    %151 = vector.multi_reduction <add>, %150, %cst_54 [1] : vector<16x32xf32> to vector<16xf32>
    %152 = vector.shape_cast %151 : vector<16xf32> to vector<16x1xf32>
    %cst_55 = arith.constant 3.200000e+01 : f32
    %153 = vector.broadcast %cst_55 : f32 to vector<16x1xf32>
    %154 = arith.divf %152, %153 : vector<16x1xf32>
    %155 = vector.broadcast %147 : vector<16x1xf32> to vector<16x32xf32>
    %156 = arith.subf %143, %155 : vector<16x32xf32>
    %cst_56 = arith.constant 9.99999974E-6 : f32
    %157 = vector.broadcast %cst_56 : f32 to vector<16x1xf32>
    %158 = arith.addf %154, %157 : vector<16x1xf32>
    %159 = math.rsqrt %158 : vector<16x1xf32>
    %160 = vector.broadcast %159 : vector<16x1xf32> to vector<16x32xf32>
    %161 = arith.mulf %156, %160 : vector<16x32xf32>
    %162 = vector.shape_cast %161 : vector<16x32xf32> to vector<2x8x32xf32>
    %163 = vector.shape_cast %6 : vector<8x32xf32> to vector<1x8x32xf32>
    %164 = vector.broadcast %163 : vector<1x8x32xf32> to vector<2x8x32xf32>
    %165 = arith.mulf %162, %164 : vector<2x8x32xf32>
    %cst_57 = arith.constant dense<0.000000e+00> : vector<2x8xf32>
    %166 = vector.multi_reduction <add>, %165, %cst_57 [2] : vector<2x8x32xf32> to vector<2x8xf32>
    %167 = vector.shape_cast %166 : vector<2x8xf32> to vector<2x8x1xf32>
    %cst_58 = arith.constant dense<0.000000e+00> : vector<2x1xf32>
    %168 = vector.multi_reduction <add>, %167, %cst_58 [1] : vector<2x8x1xf32> to vector<2x1xf32>
    %169 = vector.shape_cast %168 : vector<2x1xf32> to vector<2x1x1xf32>
    %170 = vector.shape_cast %169 : vector<2x1x1xf32> to vector<2x1xf32>
    %171 = vector.broadcast %15 : vector<1x1xf32> to vector<2x1xf32>
    %172 = arith.addf %170, %171 : vector<2x1xf32>
    %c0_59 = arith.constant 0 : index
    %c0_60 = arith.constant 0 : index
    %173 = vector.load %arg2[%c0_59, %c0_60] : memref<2x1xf32, #tpu.memory_space<vmem>>, vector<2x1xf32>
    tpu.vector_store %arg2[%c0_59, %c0_60], %172 {strides = array<i32>} : memref<2x1xf32, #tpu.memory_space<vmem>>, vector<2x1xf32>,
    return
  }
}

</mosaic_0001>

<bundles_post_ra>
// kernel: tpu_custom_call.1
= control target key start
LH: loop header
LB: loop body
LE: loop exit
PB: predicated region body
PF: predicated region fallthrough
CT: control target
= control target key end

     0   :  { %7 = vsyncpa [#allocation4], 0  ;;  %s2284_s9 = smov [#allocation3]   ;;  %s2482_s0 = inlined_call_operand.vmem [shape: f32[16,4], index: 0, kind: input, shape index: {}]   ;;  %s2483_s1 = inlined_call_operand.hbm [shape: f32[200,128], index: 1, kind: input, shape index: {}]   ;;  %s2484_s2 = inlined_call_operand.vmem [shape: f32[2,1], index: 2, kind: output, shape index: {}]  }
   0x1   :  { %s15_s10 = sshll.u32 %s2284_s9, 4  ;;  %s16_s10 = int_to_ptr.vmem [resolvable:$true] %s15_s10 }
   0x2   :  { %s2270_s11 = scalar_lea.vmem %s16_s10, 3200  ;;  %p2275_p1 = scmp.lt.s32.totalorder %s16_s10, %s16_s10 }
   0x3   :  { %p2271_p0 = scmp.ne.s32.totalorder %s16_s10, %s2270_s11  ;;  %p2276_p2 = scmp.lt.s32.totalorder %s2270_s11, %s2270_s11 }
   0x5   :  { %p2277_p3 = por %p2276_p2, %p2275_p1 }
   0x7   :  { %p2278_p4 = pnand %p2277_p3, %p2271_p0 }
   0x9   :  { %2281 = shalt.err (!%p2278_p4)
}
   0xa   :  { %s2285_s12 = smov 128   ;;  %s2286_s13 = smov 8  }
   0xb   :  { %21 = dma.hbm_to_vmem [thread:$0]  %s2483_s1, 3200, %s16_s10, [#allocation4], %s2285_s12, %s2285_s12, %s2286_s13  }
   0xc   :  { %2282 = dma.done.wait [#allocation4], 3200  }
   0xd   :  { %2283 = vsyncadd [#allocation4], 4294964096  ;;  %vm70_vm0 = vcmask 1043456   ;;  %vm63_vm1 = vcmask 31744   ;;  %v27_v0 = vld [vmem:[#allocation3] sm:$0xf] }
   0xe   :  { %v25_v1 = vld [vmem:[%s2482_s0] sm:$0xff]  ;;  %v26_v2 = vld [vmem:[%s2482_s0 + $0x8] sm:$0xff]  ;;  %2067 = vmatprep.subr.msk.mxu0 %vm70_vm0, %v27_v0  ;;  %v31_v3 = vld [vmem:[#allocation3 + $0x20] sm:$0xff]  ;;  %vm157_vm2 = vcmask 261120   ;;  %v2287_v18 = vmov 0.0   ;;  %vm2288_vm3 = vmmov 0  }
   0xf   :  { %2069 = vmatprep.mubr.msk.f32.mxu0 %vm63_vm1, %v25_v1  ;;  %2068 = vmatpush3.msk.msra.mxu0 %vm70_vm0, %v27_v0  ;;  %v30_v4 = vld [vmem:[#allocation3 + $0x18] sm:$0xff]  ;;  %v29_v5 = vld [vmem:[#allocation3 + $0x10] sm:$0xff]  ;;  %v28_v6 = vld [vmem:[#allocation3 + $0x8] sm:$0xff]  ;;  %s2289_s0 = smov 96   ;;  %vm242_vm4 = vcmask 64512   ;;  %s2290_s1 = smov 64  }
  0x10   :  { %2070 = vmatmul.mubr.msk.f32.vlgmr.msra.gmra.mxu0 %vm63_vm1, %v26_v2  ;;  %2072 = vmatprep.subr.mxu0 %v31_v3  ;;  %v1961_v7 = vld [vmem:[#allocation3 + $0xc0] ss:$0 sm:$0xff]  ;;  %v49_v13 = vld [vmem:[#allocation3 + $0xb0] sm:$0xff]  ;;  %v50_v14 = vld [vmem:[#allocation3 + $0xb8] sm:$0xff]  ;;  %s2291_s20 = smov 88   ;;  %s2292_s21 = smov 120  }
  0x11   :  { %2073 = vmatpush3.msra.mxu0 %v31_v3  ;;  %2093 = vmatprep.subr.mxu1 %v2287_v18  ;;  %v1965_v20 = vld [vmem:[#allocation3 + $0xc1] ss:$0 sm:$0xff]  ;;  %s2293_s22 = smov 56   ;;  %s2294_s23 = smov 80   ;;  %vm908_vm5 = vcmask 130112   ;;  %vm1249_vm6 = vcmask 195712  }
  0x12   :  { %2074 = vmatprep.subr.mxu0 %v30_v4  ;;  %2095 = vmatprep.mubr.msk.f32.mxu1 %vm2288_vm3, %v2287_v18  ;;  %s2295_s24 = smov 112   ;;  %s2296_s25 = smov 48   ;;  %vm1590_vm7 = vcmask 261312   ;;  %vm1812_vm8 = vcmask 523264   ;;  %vm1951_vm9 = vcmask 1041409   ;;  %vm1954_vm10 = vcmask 1024  }
  0x13   :  { %2075 = vmatpush3.msra.mxu0 %v30_v4  ;;  %s2297_s26 = smov 72   ;;  %s2298_s27 = smov 104  }
  0x14   :  { %2076 = vmatprep.subr.mxu0 %v29_v5  ;;  %s2299_s28 = smov 40   ;;  %s2300_s29 = smov 16  }
  0x15   :  { %2077 = vmatpush3.msra.mxu0 %v29_v5  ;;  %s2301_s30 = smov 24  }
  0x16   :  { %2078 = vmatprep.subr.mxu0 %v28_v6 }
  0x17   :  { %2079 = vmatpush3.msra.mxu0 %v28_v6 }
  0x18   :  { %2083 = vmatprep.subr.mxu0 %v2287_v18 }
  0xd0   :  { %v2071_v8 = vpop.f32.mrf.mxu0 }
  0xd1   :  { %v146_v9 = vadd.f32 %v2071_v8, %v1961_v7 }
  0xd2   :  { %v140_v10 = vpop.f32.mrf.mxu0 }
  0xd3   :  { %v141_v11 = vadd.f32 %v1961_v7, %v140_v10  ;;  %v150_v12 = vmax.f32 %v146_v9, 0.0 }
  0xd5   :  { %v149_v15 = vmax.f32 %v141_v11, 0.0  ;;  %v2329_v17 = vadd.f32 %v150_v12, %v50_v14 }
  0xd7   :  { %v2327_v16 = vadd.f32 %v149_v15, %v49_v13 }
  0xd9   :  { %2080 = vmatprep.mubr.msk.f32.mxu0 %vm157_vm2, %v2327_v16 }
  0xda   :  { %2081 = vmatmul.mubr.msk.f32.vlgmr.msra.gmra.mxu0 %vm157_vm2, %v2329_v17 }
  0xdb   :  { %2085 = vmatprep.mubr.msk.f32.mxu0 %vm2288_vm3, %v2287_v18 }
 0x19a   :  { %v2082_v19 = vpop.f32.mrf.mxu0 }
 0x19b   :  { %v2344_v23 = vadd.f32 %v2082_v19, %v1965_v20 }
 0x19c   :  { %v230_v21 = vpop.f32.mrf.mxu0 }
 0x19d   :  { %v2341_v22 = vadd.f32 %v1965_v20, %v230_v21 }
 0x19f   :  { %240 = vrot.lane.b32.xlu0 %v2341_v22, %s2289_s0 }
 0x1a3   :  { %318 = vrot.lane.b32.xlu0 %v2344_v23, %s2289_s0 }
 0x211   :  { %v241_v24 = vpop.permute.xlu0 %240 }
 0x212   :  { %2084 = vmatpush3.xpose.msk.msra.mxu0 %vm242_vm4, %v241_v24 }
 0x213   :  { %2088 = vmatprep.subr.mxu0 %v2287_v18 }
 0x215   :  { %2086 = vmatmul.mubr.msk.f32.vlgmr.msra.gmra.mxu0 %vm242_vm4, %v2341_v22  ;;  %v319_v25 = vpop.permute.xlu0 %318 }
 0x216   :  { %2089 = vmatpush3.xpose.msk.msra.mxu0 %vm242_vm4, %v319_v25  ;;  %2090 = vmatprep.mubr.msk.f32.mxu0 %vm2288_vm3, %v2287_v18 }
 0x217   :  { %2098 = vmatprep.subr.mxu0 %v2287_v18 }
 0x219   :  { %2091 = vmatmul.mubr.msk.f32.vlgmr.msra.gmra.mxu0 %vm242_vm4, %v2344_v23 }
 0x21a   :  { %2100 = vmatprep.mubr.msk.f32.mxu0 %vm2288_vm3, %v2287_v18 }
 0x2d5   :  { %v313_v26 = vpop.f32.mrf.mxu0 }
 0x2d6   :  { %v394_v27 = vsel %vm242_vm4, %v313_v26, -inf }
 0x2d7   :  { %395 = vmax.xlane.f32.xlu1 %v394_v27  ;;  %v2087_v28 = vpop.f32.mrf.mxu0 }
 0x2d9   :  { %v390_v29 = vpop.f32.mrf.mxu0 }
 0x2da   :  { %v397_v30 = vsel %vm242_vm4, %v390_v29, -inf }
 0x2db   :  { %398 = vmax.xlane.f32.xlu1 %v397_v30  ;;  %v2092_v31 = vpop.f32.mrf.mxu0 }
 0x2ec   :  { %416 = vrot.lane.b32.xlu1 %v2341_v22, %s2290_s1 }
 0x2f0   :  { %492 = vrot.lane.b32.xlu1 %v2344_v23, %s2290_s1 }
 0x2f4   :  { %572 = vrot.lane.b32.xlu1 %v2341_v22, %s2291_s20 }
 0x2f8   :  { %650 = vrot.lane.b32.xlu1 %v2344_v23, %s2291_s20 }
 0x360   :  { %v396_v32 = vpop.xlane.xlu1 %395 }
 0x361   :  { %v400_v33 = vsub.f32 %v313_v26, %v396_v32 }
 0x363   :  { %v402_v34 = vmul.f32 1.442695, %v400_v33 }
 0x364   :  { %v399_v35 = vpop.xlane.xlu1 %398 }
 0x365   :  { %2222 = vpow2.f32 %v402_v34  ;;  %v401_v36 = vsub.f32 %v390_v29, %v399_v35 }
 0x367   :  { %v404_v37 = vmul.f32 1.442695, %v401_v36 }
 0x368   :  { %v417_v38 = vpop.permute.xlu1 %416 }
 0x369   :  { %2224 = vpow2.f32 %v404_v37  ;;  %2094 = vmatpush3.msra.mxu1 %v417_v38 }
 0x36a   :  { %2103 = vmatprep.subr.mxu1 %v2287_v18 }
 0x36c   :  { %v493_v39 = vpop.permute.xlu1 %492 }
 0x36d   :  { %2099 = vmatpush3.msra.mxu0 %v493_v39 }
 0x36e   :  { %2108 = vmatprep.subr.mxu0 %v2287_v18 }
 0x370   :  { %v573_v44 = vpop.permute.xlu1 %572 }
 0x372   :  { %v2223_v40 = vpop.eup %2222 }
 0x373   :  { %v406_v41 = vsel %vm242_vm4, %v2223_v40, 0.0 }
 0x374   :  { %407 = vadd.xlane.f32.xlu0 %v406_v41  ;;  %v651_v45 = vpop.permute.xlu1 %650 }
 0x376   :  { %v2225_v42 = vpop.eup %2224 }
 0x377   :  { %v409_v43 = vsel %vm242_vm4, %v2225_v42, 0.0 }
 0x378   :  { %410 = vadd.xlane.f32.xlu1 %v409_v43 }
 0x389   :  { %648 = vrot.lane.b32.xlu1 %v2344_v23, %s2292_s21 }
 0x38a   :  { %570 = vrot.lane.b32.xlu0 %v2341_v22, %s2292_s21 }
 0x3fd   :  { %v408_v46 = vpop.xlane.xlu0 %407 }
 0x3fe   :  { %2226 = vrcp.f32 %v408_v46 }
 0x401   :  { %v411_v47 = vpop.xlane.xlu1 %410  ;;  %v571_v52 = vpop.permute.xlu0 %570 }
 0x402   :  { %2228 = vrcp.f32 %v411_v47 }
 0x405   :  { %v649_v53 = vpop.permute.xlu1 %648 }
 0x40b   :  { %v2227_v48 = vpop.eup %2226 }
 0x40c   :  { %v414_v49 = vmul.f32 %v2227_v48, %v2223_v40 }
 0x40e   :  { %2096 = vmatmul.mubr.msk.f32.vlgmr.msra.gmra.mxu1 %vm242_vm4, %v414_v49 }
 0x40f   :  { %v2229_v50 = vpop.eup %2228  ;;  %2104 = vmatpush3.xpose.msk.msra.mxu1 %vm242_vm4, %v573_v44  ;;  %2105 = vmatprep.mubr.msk.f32.mxu1 %vm2288_vm3, %v2287_v18 }
 0x410   :  { %v415_v51 = vmul.f32 %v2229_v50, %v2225_v42  ;;  %2113 = vmatprep.subr.mxu1 %v2287_v18 }
 0x412   :  { %2101 = vmatmul.mubr.msk.f32.vlgmr.msra.gmra.mxu0 %vm242_vm4, %v415_v51  ;;  %2106 = vmatmul.mubr.msk.f32.vlgmr.msra.gmra.mxu1 %vm242_vm4, %v571_v52 }
 0x413   :  { %2109 = vmatpush3.xpose.msk.msra.mxu0 %vm242_vm4, %v651_v45  ;;  %2110 = vmatprep.mubr.msk.f32.mxu0 %vm2288_vm3, %v2287_v18 }
 0x414   :  { %2118 = vmatprep.subr.mxu0 %v2287_v18  ;;  %2115 = vmatprep.mubr.msk.f32.mxu1 %vm2288_vm3, %v2287_v18 }
 0x416   :  { %2111 = vmatmul.mubr.msk.f32.vlgmr.msra.gmra.mxu0 %vm242_vm4, %v649_v53 }
 0x417   :  { %2120 = vmatprep.mubr.msk.f32.mxu0 %vm2288_vm3, %v2287_v18 }
 0x4ce   :  { %v488_v54 = vpop.f32.mrf.mxu1 }
 0x4cf   :  { %568 = vst.msk [vmem:[#allocation2] sm:$0xff] %vm242_vm4, %v488_v54 }
 0x4d0   :  { %v2097_v55 = vpop.f32.mrf.mxu1 }
 0x4d2   :  { %v564_v56 = vpop.f32.mrf.mxu0  ;;  %v644_v57 = vpop.f32.mrf.mxu1 }
 0x4d3   :  { %569 = vst.msk [vmem:[#allocation2 + $0x8] sm:$0xff] %vm242_vm4, %v564_v56  ;;  %v726_v58 = vsel %vm242_vm4, %v644_v57, -inf }
 0x4d4   :  { %v2102_v59 = vpop.f32.mrf.mxu0  ;;  %727 = vmax.xlane.f32.xlu1 %v726_v58  ;;  %v2107_v60 = vpop.f32.mrf.mxu1 }
 0x4d6   :  { %v722_v61 = vpop.f32.mrf.mxu0 }
 0x4d7   :  { %v729_v62 = vsel %vm242_vm4, %v722_v61, -inf }
 0x4d8   :  { %730 = vmax.xlane.f32.xlu0 %v729_v62  ;;  %v2112_v63 = vpop.f32.mrf.mxu0 }
 0x4e5   :  { %748 = vrot.lane.b32.xlu1 %v2341_v22, %s2293_s22 }
 0x4e9   :  { %913 = vrot.lane.b32.xlu1 %v2341_v22, %s2294_s23 }
 0x4ed   :  { %991 = vrot.lane.b32.xlu1 %v2344_v23, %s2294_s23 }
 0x4ee   :  { %824 = vrot.lane.b32.xlu0 %v2344_v23, %s2293_s22 }
 0x4f2   :  { %911 = vrot.lane.b32.xlu0 %v2341_v22, %s2295_s24 }
 0x55d   :  { %v728_v0 = vpop.xlane.xlu1 %727 }
 0x55e   :  { %v732_v1 = vsub.f32 %v644_v57, %v728_v0 }
 0x560   :  { %v734_v2 = vmul.f32 1.442695, %v732_v1 }
 0x561   :  { %v749_v3 = vpop.permute.xlu1 %748  ;;  %v731_v4 = vpop.xlane.xlu0 %730 }
 0x562   :  { %2230 = vpow2.f32 %v734_v2  ;;  %v733_v5 = vsub.f32 %v722_v61, %v731_v4  ;;  %2114 = vmatpush3.msra.mxu1 %v749_v3 }
 0x563   :  { %2123 = vmatprep.subr.mxu1 %v2287_v18 }
 0x564   :  { %v736_v6 = vmul.f32 1.442695, %v733_v5 }
 0x565   :  { %v825_v7 = vpop.permute.xlu0 %824  ;;  %v914_v12 = vpop.permute.xlu1 %913 }
 0x566   :  { %2232 = vpow2.f32 %v736_v6  ;;  %2119 = vmatpush3.msra.mxu0 %v825_v7 }
 0x567   :  { %2128 = vmatprep.subr.mxu0 %v2287_v18 }
 0x569   :  { %v992_v13 = vpop.permute.xlu1 %991  ;;  %v912_v25 = vpop.permute.xlu0 %911 }
 0x56f   :  { %v2231_v8 = vpop.eup %2230 }
 0x570   :  { %v738_v9 = vsel %vm242_vm4, %v2231_v8, 0.0 }
 0x571   :  { %739 = vadd.xlane.f32.xlu1 %v738_v9 }
 0x573   :  { %v2233_v10 = vpop.eup %2232 }
 0x574   :  { %v741_v11 = vsel %vm242_vm4, %v2233_v10, 0.0 }
 0x575   :  { %742 = vadd.xlane.f32.xlu1 %v741_v11 }
 0x586   :  { %989 = vrot.lane.b32.xlu1 %v2344_v23, %s2295_s24 }
 0x5fa   :  { %v740_v14 = vpop.xlane.xlu1 %739 }
 0x5fb   :  { %2234 = vrcp.f32 %v740_v14 }
 0x5fe   :  { %v743_v15 = vpop.xlane.xlu1 %742 }
 0x5ff   :  { %2236 = vrcp.f32 %v743_v15 }
 0x602   :  { %v990_v26 = vpop.permute.xlu1 %989 }
 0x608   :  { %v2235_v19 = vpop.eup %2234 }
 0x609   :  { %v746_v20 = vmul.f32 %v2235_v19, %v2231_v8 }
 0x60b   :  { %2116 = vmatmul.mubr.msk.f32.vlgmr.msra.gmra.mxu1 %vm242_vm4, %v746_v20 }
 0x60c   :  { %v2237_v21 = vpop.eup %2236  ;;  %2124 = vmatpush3.xpose.msk.msra.mxu1 %vm242_vm4, %v914_v12  ;;  %2125 = vmatprep.mubr.msk.f32.mxu1 %vm2288_vm3, %v2287_v18 }
 0x60d   :  { %v747_v24 = vmul.f32 %v2237_v21, %v2233_v10  ;;  %2133 = vmatprep.subr.mxu1 %v2287_v18 }
 0x60f   :  { %2121 = vmatmul.mubr.msk.f32.vlgmr.msra.gmra.mxu0 %vm242_vm4, %v747_v24  ;;  %2126 = vmatmul.mubr.msk.f32.vlgmr.msra.gmra.mxu1 %vm242_vm4, %v912_v25 }
 0x610   :  { %2129 = vmatpush3.xpose.msk.msra.mxu0 %vm242_vm4, %v992_v13  ;;  %2130 = vmatprep.mubr.msk.f32.mxu0 %vm2288_vm3, %v2287_v18 }
 0x611   :  { %2138 = vmatprep.subr.mxu0 %v2287_v18  ;;  %2135 = vmatprep.mubr.msk.f32.mxu1 %vm2288_vm3, %v2287_v18 }
 0x613   :  { %2131 = vmatmul.mubr.msk.f32.vlgmr.msra.gmra.mxu0 %vm242_vm4, %v990_v26 }
 0x614   :  { %2140 = vmatprep.mubr.msk.f32.mxu0 %vm2288_vm3, %v2287_v18 }
 0x6cb   :  { %v2417_v27 = vpop.f32.mrf.mxu1 }
 0x6cd   :  { %v2117_v28 = vpop.f32.mrf.mxu1 }
 0x6cf   :  { %v2419_v29 = vpop.f32.mrf.mxu0  ;;  %v985_v30 = vpop.f32.mrf.mxu1 }
 0x6d0   :  { %v1067_v31 = vsel %vm242_vm4, %v985_v30, -inf }
 0x6d1   :  { %v2122_v32 = vpop.f32.mrf.mxu0  ;;  %1068 = vmax.xlane.f32.xlu0 %v1067_v31  ;;  %v2127_v33 = vpop.f32.mrf.mxu1  ;;  %v33_v31 = vld [vmem:[#allocation3 + $0x30] sm:$0xff] }
 0x6d2   :  { %v32_v32 = vld [vmem:[#allocation3 + $0x28] sm:$0xff] }
 0x6d3   :  { %v1063_v34 = vpop.f32.mrf.mxu0 }
 0x6d4   :  { %v1070_v35 = vsel %vm242_vm4, %v1063_v34, -inf }
 0x6d5   :  { %1071 = vmax.xlane.f32.xlu1 %v1070_v35  ;;  %v2132_v36 = vpop.f32.mrf.mxu0 }
 0x6e6   :  { %1089 = vrot.lane.b32.xlu1 %v2341_v22, %s2296_s25 }
 0x6e7   :  { %1165 = vrot.lane.b32.xlu0 %v2344_v23, %s2296_s25 }
 0x6ea   :  { %1254 = vrot.lane.b32.xlu1 %v2341_v22, %s2297_s26 }
 0x6ee   :  { %1332 = vrot.lane.b32.xlu1 %v2344_v23, %s2297_s26 }
 0x6f2   :  { %1330 = vrot.lane.b32.xlu1 %v2344_v23, %s2298_s27 }
 0x75a   :  { %v1069_v37 = vpop.xlane.xlu0 %1068 }
 0x75b   :  { %v1073_v38 = vsub.f32 %v985_v30, %v1069_v37  ;;  %v35_v30 = vld [vmem:[#allocation3 + $0x40] sm:$0xff] }
 0x75d   :  { %v1075_v39 = vmul.f32 1.442695, %v1073_v38 }
 0x75e   :  { %v1072_v40 = vpop.xlane.xlu1 %1071  ;;  %v1166_v41 = vpop.permute.xlu0 %1165 }
 0x75f   :  { %2238 = vpow2.f32 %v1075_v39  ;;  %v1074_v42 = vsub.f32 %v1063_v34, %v1072_v40  ;;  %2139 = vmatpush3.msra.mxu0 %v1166_v41  ;;  %v1992_v41 = vld [vmem:[#allocation3 + $0xc2] ss:$0 sm:$0xff] }
 0x760   :  { %2148 = vmatprep.subr.mxu0 %v2287_v18 }
 0x761   :  { %v1077_v43 = vmul.f32 1.442695, %v1074_v42 }
 0x762   :  { %v1090_v44 = vpop.permute.xlu1 %1089 }
 0x763   :  { %2240 = vpow2.f32 %v1077_v43  ;;  %2134 = vmatpush3.msra.mxu1 %v1090_v44 }
 0x764   :  { %2143 = vmatprep.subr.mxu1 %v2287_v18 }
 0x766   :  { %v1255_v51 = vpop.permute.xlu1 %1254 }
 0x76a   :  { %v1333_v55 = vpop.permute.xlu1 %1332 }
 0x76c   :  { %v2239_v45 = vpop.eup %2238 }
 0x76d   :  { %v1079_v46 = vsel %vm242_vm4, %v2239_v45, 0.0 }
 0x76e   :  { %1080 = vadd.xlane.f32.xlu0 %v1079_v46  ;;  %v1331_v58 = vpop.permute.xlu1 %1330 }
 0x770   :  { %v2241_v47 = vpop.eup %2240 }
 0x771   :  { %v1082_v48 = vsel %vm242_vm4, %v2241_v47, 0.0 }
 0x772   :  { %1083 = vadd.xlane.f32.xlu0 %v1082_v48 }
 0x788   :  { %1252 = vrot.lane.b32.xlu0 %v2341_v22, %s2298_s27 }
 0x7f7   :  { %v1081_v49 = vpop.xlane.xlu0 %1080 }
 0x7f8   :  { %2242 = vrcp.f32 %v1081_v49 }
 0x7fb   :  { %v1084_v50 = vpop.xlane.xlu0 %1083 }
 0x7fc   :  { %2244 = vrcp.f32 %v1084_v50 }
 0x7ff   :  { %v1253_v57 = vpop.permute.xlu0 %1252 }
 0x805   :  { %v2243_v52 = vpop.eup %2242 }
 0x806   :  { %v1087_v53 = vmul.f32 %v2243_v52, %v2239_v45 }
 0x808   :  { %2136 = vmatmul.mubr.msk.f32.vlgmr.msra.gmra.mxu1 %vm242_vm4, %v1087_v53 }
 0x809   :  { %v2245_v54 = vpop.eup %2244  ;;  %2144 = vmatpush3.xpose.msk.msra.mxu1 %vm242_vm4, %v1255_v51  ;;  %2145 = vmatprep.mubr.msk.f32.mxu1 %vm2288_vm3, %v2287_v18 }
 0x80a   :  { %v1088_v56 = vmul.f32 %v2245_v54, %v2241_v47  ;;  %2153 = vmatprep.subr.mxu1 %v2287_v18 }
 0x80c   :  { %2141 = vmatmul.mubr.msk.f32.vlgmr.msra.gmra.mxu0 %vm242_vm4, %v1088_v56  ;;  %2146 = vmatmul.mubr.msk.f32.vlgmr.msra.gmra.mxu1 %vm242_vm4, %v1253_v57 }
 0x80d   :  { %2149 = vmatpush3.xpose.msk.msra.mxu0 %vm242_vm4, %v1333_v55  ;;  %2150 = vmatprep.mubr.msk.f32.mxu0 %vm2288_vm3, %v2287_v18 }
 0x80e   :  { %2158 = vmatprep.subr.mxu0 %v2287_v18  ;;  %2155 = vmatprep.mubr.msk.f32.mxu1 %vm2288_vm3, %v2287_v18 }
 0x810   :  { %2151 = vmatmul.mubr.msk.f32.vlgmr.msra.gmra.mxu0 %vm242_vm4, %v1331_v58 }
 0x811   :  { %2160 = vmatprep.mubr.msk.f32.mxu0 %vm2288_vm3, %v2287_v18 }
 0x8c8   :  { %v1161_v59 = vpop.f32.mrf.mxu1 }
 0x8ca   :  { %v2137_v60 = vpop.f32.mrf.mxu1 }
 0x8cb   :  { %v37_v60 = vld [vmem:[#allocation3 + $0x50] sm:$0xff] }
 0x8cc   :  { %v1237_v61 = vpop.f32.mrf.mxu0  ;;  %v1326_v62 = vpop.f32.mrf.mxu1 }
 0x8cd   :  { %v1408_v63 = vsel %vm242_vm4, %v1326_v62, -inf }
 0x8ce   :  { %v2142_v0 = vpop.f32.mrf.mxu0  ;;  %1409 = vmax.xlane.f32.xlu0 %v1408_v63  ;;  %v2147_v1 = vpop.f32.mrf.mxu1  ;;  %v46_v63 = vld [vmem:[#allocation3 + $0x98] sm:$0xff] }
 0x8cf   :  { %v45_v0 = vld [vmem:[#allocation3 + $0x90] sm:$0xff]  ;;  %v44_v1 = vld [vmem:[#allocation3 + $0x88] sm:$0xff] }
 0x8d0   :  { %v1404_v2 = vpop.f32.mrf.mxu0 }
 0x8d1   :  { %v1411_v3 = vsel %vm242_vm4, %v1404_v2, -inf }
 0x8d2   :  { %1412 = vmax.xlane.f32.xlu1 %v1411_v3  ;;  %v2152_v4 = vpop.f32.mrf.mxu0 }
 0x8e3   :  { %1430 = vrot.lane.b32.xlu1 %v2341_v22, %s2299_s28 }
 0x8e7   :  { %902 = vrot.lane.b32.xlu1 %v2417_v27, %s2286_s13 }
 0x8eb   :  { %904 = vrot.lane.b32.xlu1 %v2419_v29, %s2286_s13 }
 0x8ef   :  { %1245 = vrot.lane.b32.xlu1 %v1237_v61, %s2300_s29  ;;  %v36_v61 = vld [vmem:[#allocation3 + $0x48] sm:$0xff] }
 0x957   :  { %v1410_v18 = vpop.xlane.xlu0 %1409 }
 0x958   :  { %v1414_v5 = vsub.f32 %v1326_v62, %v1410_v18  ;;  %v47_v62 = vld [vmem:[#allocation3 + $0xa0] sm:$0xff] }
 0x95a   :  { %v1416_v6 = vmul.f32 1.442695, %v1414_v5 }
 0x95b   :  { %v1413_v7 = vpop.xlane.xlu1 %1412 }
 0x95c   :  { %2246 = vpow2.f32 %v1416_v6  ;;  %v1415_v8 = vsub.f32 %v1404_v2, %v1413_v7 }
 0x95e   :  { %v1418_v9 = vmul.f32 1.442695, %v1415_v8  ;;  %v1995_v8 = vld [vmem:[#allocation3 + $0xc3] ss:$0 sm:$0xff] }
 0x95f   :  { %v1431_v10 = vpop.permute.xlu1 %1430 }
 0x960   :  { %2248 = vpow2.f32 %v1418_v9  ;;  %2154 = vmatpush3.msra.mxu1 %v1431_v10  ;;  %v1996_v10 = vld [vmem:[#allocation3 + $0xc4] ss:$0 sm:$0xff] }
 0x961   :  { %2163 = vmatprep.subr.mxu1 %v35_v30 }
 0x963   :  { %v903_v22 = vpop.permute.xlu1 %902 }
 0x964   :  { %909 = vst.msk [vmem:[#allocation2] sm:$0xff] %vm908_vm5, %v903_v22 }
 0x967   :  { %v905_v11 = vpop.permute.xlu1 %904 }
 0x968   :  { %910 = vst.msk [vmem:[#allocation2 + $0x8] sm:$0xff] %vm908_vm5, %v905_v11 }
 0x969   :  { %v2247_v12 = vpop.eup %2246 }
 0x96a   :  { %v1420_v13 = vsel %vm242_vm4, %v2247_v12, 0.0 }
 0x96b   :  { %v1246_v14 = vpop.permute.xlu1 %1245  ;;  %1421 = vadd.xlane.f32.xlu0 %v1420_v13 }
 0x96c   :  { %1251 = vst.msk [vmem:[#allocation2 + $0x8] sm:$0xff] %vm1249_vm6, %v1246_v14 }
 0x96d   :  { %v2249_v15 = vpop.eup %2248 }
 0x96e   :  { %v1423_v19 = vsel %vm242_vm4, %v2249_v15, 0.0 }
 0x96f   :  { %1424 = vadd.xlane.f32.xlu0 %v1423_v19  ;;  %v43_v19 = vld [vmem:[#allocation3 + $0x80] sm:$0xff] }
 0x985   :  { %1506 = vrot.lane.b32.xlu0 %v2344_v23, %s2299_s28  ;;  %v34_v23 = vld [vmem:[#allocation3 + $0x38] sm:$0xff] }
 0x989   :  { %1243 = vrot.lane.b32.xlu0 %v1161_v59, %s2300_s29  ;;  %v39_v59 = vld [vmem:[#allocation3 + $0x60] sm:$0xff] }
 0x9f4   :  { %v1422_v20 = vpop.xlane.xlu0 %1421 }
 0x9f5   :  { %2250 = vrcp.f32 %v1422_v20  ;;  %v42_v20 = vld [vmem:[#allocation3 + $0x78] sm:$0xff] }
 0x9f8   :  { %v1425_v21 = vpop.xlane.xlu0 %1424 }
 0x9f9   :  { %2252 = vrcp.f32 %v1425_v21  ;;  %v41_v21 = vld [vmem:[#allocation3 + $0x70] sm:$0xff] }
 0x9fc   :  { %v1507_v24 = vpop.permute.xlu0 %1506 }
 0x9fd   :  { %2159 = vmatpush3.msra.mxu0 %v1507_v24  ;;  %v40_v24 = vld [vmem:[#allocation3 + $0x68] sm:$0xff] }
 0x9fe   :  { %2174 = vmatprep.subr.mxu0 %v39_v59 }
 0xa00   :  { %v1244_v25 = vpop.permute.xlu0 %1243 }
 0xa01   :  { %1250 = vst.msk [vmem:[#allocation2] sm:$0xff] %vm1249_vm6, %v1244_v25  ;;  %v1997_v25 = vld [vmem:[#allocation3 + $0xc5] ss:$0 sm:$0xff] }
 0xa02   :  { %v2251_v26 = vpop.eup %2250 }
 0xa03   :  { %v1428_v27 = vmul.f32 %v2251_v26, %v2247_v12 }
 0xa05   :  { %2156 = vmatmul.mubr.msk.f32.vlgmr.msra.gmra.mxu1 %vm242_vm4, %v1428_v27 }
 0xa06   :  { %v2253_v28 = vpop.eup %2252  ;;  %2164 = vmatpush3.msra.mxu1 %v35_v30 }
 0xa07   :  { %v1429_v29 = vmul.f32 %v2253_v28, %v2249_v15  ;;  %2165 = vmatprep.subr.mxu1 %v34_v23 }
 0xa08   :  { %2166 = vmatpush3.msra.mxu1 %v34_v23 }
 0xa09   :  { %2161 = vmatmul.mubr.msk.f32.vlgmr.msra.gmra.mxu0 %vm242_vm4, %v1429_v29  ;;  %2167 = vmatprep.subr.mxu1 %v33_v31 }
 0xa0a   :  { %2168 = vmatpush3.msra.mxu1 %v33_v31  ;;  %2175 = vmatpush3.msra.mxu0 %v39_v59  ;;  %v2000_v31 = vld [vmem:[#allocation3 + $0xc6] ss:$0 sm:$0xff] }
 0xa0b   :  { %2169 = vmatprep.subr.mxu1 %v32_v32 }
 0xa0c   :  { %2170 = vmatpush3.msra.mxu1 %v32_v32 }
 0xa0d   :  { %2185 = vmatprep.subr.mxu1 %v47_v62 }
 0xac5   :  { %v1502_v33 = vpop.f32.mrf.mxu1 }
 0xac6   :  { %1584 = vrot.lane.b32.xlu0 %v1502_v33, %s2301_s30 }
 0xac7   :  { %v2157_v34 = vpop.f32.mrf.mxu1 }
 0xac9   :  { %v1578_v35 = vpop.f32.mrf.mxu0 }
 0xaca   :  { %1586 = vrot.lane.b32.xlu1 %v1578_v35, %s2301_s30 }
 0xacb   :  { %v2162_v36 = vpop.f32.mrf.mxu0 }
 0xb38   :  { %v1585_v37 = vpop.permute.xlu0 %1584 }
 0xb39   :  { %1591 = vst.msk [vmem:[#allocation2] sm:$0xff] %vm1590_vm7, %v1585_v37 }
 0xb3c   :  { %v1587_v38 = vpop.permute.xlu1 %1586 }
 0xb3d   :  { %1592 = vst.msk [vmem:[#allocation2 + $0x8] sm:$0xff] %vm1590_vm7, %v1587_v38 }
 0xb40   :  { %v1593_v39 = vld [vmem:[#allocation2] sm:$0xff] }
 0xb41   :  { %2171 = vmatprep.mubr.msk.f32.mxu1 %vm157_vm2, %v1593_v39 }
 0xb44   :  { %v1594_v40 = vld [vmem:[#allocation2 + $0x8] sm:$0xff] }
 0xb45   :  { %2172 = vmatmul.mubr.msk.f32.vlgmr.msra.gmra.mxu1 %vm157_vm2, %v1594_v40 }
 0xb46   :  { %2186 = vmatpush3.msra.mxu1 %v47_v62 }
 0xb47   :  { %2187 = vmatprep.subr.mxu1 %v46_v63 }
 0xb48   :  { %2188 = vmatpush3.msra.mxu1 %v46_v63 }
 0xb49   :  { %2189 = vmatprep.subr.mxu1 %v45_v0 }
 0xb4a   :  { %2190 = vmatpush3.msra.mxu1 %v45_v0 }
 0xb4b   :  { %2191 = vmatprep.subr.mxu1 %v44_v1 }
 0xb4c   :  { %2192 = vmatpush3.msra.mxu1 %v44_v1 }
 0xb4d   :  { %2193 = vmatprep.subr.mxu1 %v43_v19 }
 0xb4e   :  { %2194 = vmatpush3.msra.mxu1 %v43_v19 }
 0xb4f   :  { %2195 = vmatprep.subr.mxu1 %v42_v20 }
 0xb50   :  { %2196 = vmatpush3.msra.mxu1 %v42_v20 }
 0xb51   :  { %2197 = vmatprep.subr.mxu1 %v41_v21 }
 0xb52   :  { %2198 = vmatpush3.msra.mxu1 %v41_v21 }
 0xb53   :  { %2199 = vmatprep.subr.mxu1 %v40_v24 }
 0xb54   :  { %2200 = vmatpush3.msra.mxu1 %v40_v24 }
 0xc05   :  { %v2173_v42 = vpop.f32.mrf.mxu1 }
 0xc06   :  { %v1677_v43 = vadd.f32 %v2173_v42, %v1992_v41 }
 0xc07   :  { %v1671_v44 = vpop.f32.mrf.mxu1 }
 0xc08   :  { %v1672_v45 = vadd.f32 %v1992_v41, %v1671_v44  ;;  %v1681_v46 = vadd.f32 %v1677_v43, %v2329_v17 }
 0xc0a   :  { %v1685_v47 = vsel %vm157_vm2, %v1681_v46, 0.0  ;;  %v1680_v48 = vadd.f32 %v1672_v45, %v2327_v16  ;;  %v38_v16 = vld [vmem:[#allocation3 + $0x58] sm:$0xff] }
 0xc0b   :  { %1686 = vadd.xlane.f32.xlu1 %v1685_v47  ;;  %2176 = vmatprep.subr.mxu0 %v38_v16 }
 0xc0c   :  { %v1682_v49 = vsel %vm157_vm2, %v1680_v48, 0.0  ;;  %2177 = vmatpush3.msra.mxu0 %v38_v16 }
 0xc0d   :  { %1683 = vadd.xlane.f32.xlu0 %v1682_v49  ;;  %2178 = vmatprep.subr.mxu0 %v37_v60 }
 0xc0e   :  { %2179 = vmatpush3.msra.mxu0 %v37_v60 }
 0xc0f   :  { %2180 = vmatprep.subr.mxu0 %v36_v61 }
 0xc10   :  { %2181 = vmatpush3.msra.mxu0 %v36_v61 }
 0xc94   :  { %v1687_v50 = vpop.xlane.xlu1 %1686 }
 0xc95   :  { %v1690_v51 = vmul.f32 0.03125, %v1687_v50 }
 0xc96   :  { %v1684_v52 = vpop.xlane.xlu0 %1683 }
 0xc97   :  { %v1689_v53 = vmul.f32 0.03125, %v1684_v52  ;;  %v1692_v54 = vsub.f32 %v1681_v46, %v1690_v51 }
 0xc99   :  { %v1691_v55 = vsub.f32 %v1680_v48, %v1689_v53  ;;  %v1694_v58 = vmul.f32 %v1692_v54, %v1692_v54 }
 0xc9b   :  { %v1693_v56 = vmul.f32 %v1691_v55, %v1691_v55  ;;  %v1698_v17 = vsel %vm157_vm2, %v1694_v58, 0.0 }
 0xc9d   :  { %v1695_v57 = vsel %vm157_vm2, %v1693_v56, 0.0 }
 0xc9e   :  { %1696 = vadd.xlane.f32.xlu0 %v1695_v57  ;;  %v48_v57 = vld [vmem:[#allocation3 + $0xa8] sm:$0xff] }
 0xca2   :  { %1699 = vadd.xlane.f32.xlu0 %v1698_v17 }
 0xd27   :  { %v1697_v2 = vpop.xlane.xlu0 %1696 }
 0xd28   :  { %v1701_v3 = vmul.f32 0.03125, %v1697_v2 }
 0xd2a   :  { %v1703_v4 = vadd.f32 1e-05, %v1701_v3 }
 0xd2b   :  { %v1700_v18 = vpop.xlane.xlu0 %1699 }
 0xd2c   :  { %2254 = vrsqrt.f32 %v1703_v4  ;;  %v1702_v5 = vmul.f32 0.03125, %v1700_v18 }
 0xd2e   :  { %v1704_v6 = vadd.f32 1e-05, %v1702_v5 }
 0xd30   :  { %2256 = vrsqrt.f32 %v1704_v6 }
 0xd39   :  { %v2255_v7 = vpop.eup %2254 }
 0xd3a   :  { %v1707_v9 = vmul.f32 %v2255_v7, %v1691_v55 }
 0xd3c   :  { %v1713_v22 = vmul.f32 %v1995_v8, %v1707_v9  ;;  %v2003_v9 = vld [vmem:[#allocation3 + $0xc7] ss:$0 sm:$0xff] }
 0xd3d   :  { %v2257_v11 = vpop.eup %2256 }
 0xd3e   :  { %v1708_v12 = vmul.f32 %v2257_v11, %v1692_v54  ;;  %v1719_v13 = vadd.f32 %v1996_v10, %v1713_v22 }
 0xd40   :  { %v1714_v14 = vmul.f32 %v1995_v8, %v1708_v12  ;;  %2182 = vmatprep.mubr.msk.f32.mxu0 %vm157_vm2, %v1719_v13 }
 0xd42   :  { %v1720_v15 = vadd.f32 %v1996_v10, %v1714_v14 }
 0xd44   :  { %2183 = vmatmul.mubr.msk.f32.vlgmr.msra.gmra.mxu0 %vm157_vm2, %v1720_v15 }
 0xe04   :  { %v2184_v26 = vpop.f32.mrf.mxu0 }
 0xe05   :  { %v1803_v27 = vadd.f32 %v2184_v26, %v1997_v25 }
 0xe06   :  { %v1797_v28 = vpop.f32.mrf.mxu0 }
 0xe07   :  { %v1798_v29 = vadd.f32 %v1997_v25, %v1797_v28  ;;  %v1807_v23 = vmax.f32 %v1803_v27, 0.0 }
 0xe09   :  { %v1806_v30 = vmax.f32 %v1798_v29, 0.0 }
 0xe0b   :  { %2201 = vmatprep.mubr.msk.f32.mxu1 %vm1812_vm8, %v1806_v30 }
 0xe0c   :  { %2202 = vmatmul.mubr.msk.f32.vlgmr.msra.gmra.mxu1 %vm1812_vm8, %v1807_v23 }
 0xecc   :  { %v2203_v32 = vpop.f32.mrf.mxu1 }
 0xecd   :  { %v1891_v33 = vadd.f32 %v2203_v32, %v2000_v31 }
 0xece   :  { %v1885_v34 = vpop.f32.mrf.mxu1 }
 0xecf   :  { %v1886_v35 = vadd.f32 %v2000_v31, %v1885_v34  ;;  %v1895_v36 = vadd.f32 %v1891_v33, %v1720_v15 }
 0xed1   :  { %v1899_v37 = vsel %vm157_vm2, %v1895_v36, 0.0  ;;  %v1894_v38 = vadd.f32 %v1886_v35, %v1719_v13 }
 0xed2   :  { %1900 = vadd.xlane.f32.xlu1 %v1899_v37 }
 0xed3   :  { %v1896_v39 = vsel %vm157_vm2, %v1894_v38, 0.0 }
 0xed4   :  { %1897 = vadd.xlane.f32.xlu0 %v1896_v39 }
 0xf5b   :  { %v1901_v40 = vpop.xlane.xlu1 %1900 }
 0xf5c   :  { %v1903_v41 = vmul.f32 0.03125, %v1901_v40 }
 0xf5d   :  { %v1898_v42 = vpop.xlane.xlu0 %1897 }
 0xf5e   :  { %v1905_v43 = vsub.f32 %v1895_v36, %v1903_v41  ;;  %v1902_v44 = vmul.f32 0.03125, %v1898_v42 }
 0xf60   :  { %v1904_v45 = vsub.f32 %v1894_v38, %v1902_v44  ;;  %v1907_v46 = vmul.f32 %v1905_v43, %v1905_v43 }
 0xf62   :  { %v1911_v47 = vsel %vm157_vm2, %v1907_v46, 0.0  ;;  %v1906_v48 = vmul.f32 %v1904_v45, %v1904_v45 }
 0xf63   :  { %1912 = vadd.xlane.f32.xlu1 %v1911_v47 }
 0xf64   :  { %v1908_v49 = vsel %vm157_vm2, %v1906_v48, 0.0 }
 0xf65   :  { %1909 = vadd.xlane.f32.xlu0 %v1908_v49 }
 0xfec   :  { %v1913_v50 = vpop.xlane.xlu1 %1912 }
 0xfed   :  { %v1915_v51 = vmul.f32 0.03125, %v1913_v50 }
 0xfee   :  { %v1910_v52 = vpop.xlane.xlu0 %1909 }
 0xfef   :  { %v1917_v53 = vadd.f32 1e-05, %v1915_v51  ;;  %v1914_v54 = vmul.f32 0.03125, %v1910_v52 }
 0xff1   :  { %2258 = vrsqrt.f32 %v1917_v53  ;;  %v1916_v55 = vadd.f32 1e-05, %v1914_v54 }
 0xff3   :  { %2260 = vrsqrt.f32 %v1916_v55 }
 0xffe   :  { %v2259_v56 = vpop.eup %2258 }
 0xfff   :  { %v1921_v58 = vmul.f32 %v2259_v56, %v1905_v43 }
0x1000   :  { %v2261_v17 = vpop.eup %2260 }
0x1001   :  { %v1923_v59 = vmul.f32 %v1921_v58, %v48_v57  ;;  %v1920_v16 = vmul.f32 %v2261_v17, %v1904_v45 }
0x1003   :  { %v1927_v60 = vsel %vm157_vm2, %v1923_v59, 0.0  ;;  %v1922_v61 = vmul.f32 %v1920_v16, %v48_v57 }
0x1004   :  { %1928 = vadd.xlane.f32.xlu1 %v1927_v60 }
0x1005   :  { %v1924_v62 = vsel %vm157_vm2, %v1922_v61, 0.0 }
0x1006   :  { %1925 = vadd.xlane.f32.xlu0 %v1924_v62 }
0x108d   :  { %v1929_v63 = vpop.xlane.xlu1 %1928 }
0x108e   :  { %v1936_v0 = vrot.slane %v1929_v63, 4 }
0x108f   :  { %v1926_v1 = vpop.xlane.xlu0 %1925 }
0x1090   :  { %v1937_v2 = vadd.f32 %v1936_v0, %v1929_v63  ;;  %v1930_v3 = vrot.slane %v1926_v1, 4 }
0x1092   :  { %v1938_v4 = vrot.slane %v1937_v2, 2  ;;  %v1931_v18 = vadd.f32 %v1930_v3, %v1926_v1 }
0x1094   :  { %v1939_v5 = vadd.f32 %v1938_v4, %v1937_v2  ;;  %v1932_v6 = vrot.slane %v1931_v18, 2 }
0x1096   :  { %v1940_v7 = vrot.slane %v1939_v5, 1  ;;  %v1933_v8 = vadd.f32 %v1932_v6, %v1931_v18 }
0x1098   :  { %v1941_v10 = vadd.f32 %v1940_v7, %v1939_v5  ;;  %v1934_v22 = vrot.slane %v1933_v8, 1 }
0x109a   :  { %v1947_v11 = vadd.f32 %v2003_v9, %v1941_v10  ;;  %v1935_v12 = vadd.f32 %v1934_v22, %v1933_v8 }
0x109c   :  { %v1950_v13 = vrot.slane %v1947_v11, 7  ;;  %v1946_v14 = vadd.f32 %v2003_v9, %v1935_v12 }
0x109e   :  { %v1952_v15 = vsel %vm1951_vm9, %v1950_v13, %v1946_v14 }
0x109f   :  { %1955 = vst.msk [vmem:[%s2484_s2] sm:$0x3] %vm1954_vm10, %v1952_v15 }
0x10a0   :  { %1960 = vsyncpa [#allocation4], 1 }

</bundles_post_ra>
